<compile_context>
chip_gen: v7x
topology: tpu7x:2x2x1
jax: 0.10.0
libtpu: 0.0.40
codegen_flags: <defaults>
</compile_context>

<pallas_src>
import functools
import math

import jax
import jax.numpy as jnp
from jax.experimental import pallas as pl
from jax.experimental.pallas import tpu as pltpu

EPS = 1e-6                                  # matches epsilon=1e-06 in the module
_EXACT = jax.lax.Precision.HIGHEST          # tiny Gram / fold matmuls only

# TODO(synk): BatchNorm running_mean/running_var buffer updates (a training-time
# side effect) are not emitted; the training-mode forward output never reads them.


# ----------------------------------------------------------------------------
# Per-chip VMEM budgeting
# ----------------------------------------------------------------------------

def _vmem_capacity_bytes():
    """Physical VMEM per core; falls back to the smallest across generations."""
    try:
        return int(pltpu.get_tpu_info().vmem_capacity_bytes)
    except Exception:
        return 64 * 1024 * 1024             # v7x per-TensorCore VMEM


def _vmem_limit_bytes():
    return int(0.75 * _vmem_capacity_bytes())


def _derive_fused_max_m(i_dim, l1, l2):
    """Largest M for which the fully fused single-VMEM-block kernel is used."""
    bytes_per_col = 4 * (i_dim + 3 * (l1 + l2) + 2)     # generous live estimate
    return max(1024, int(0.7 * _vmem_limit_bytes()) // bytes_per_col)


# ----------------------------------------------------------------------------
# Fused path (whole problem resident in VMEM) — used for small / medium M.
# ----------------------------------------------------------------------------

def _bn_relu_lane(h, gamma, beta):
    """Training-mode BatchNorm over the lane (M) axis + ReLU.

    h: (C, M); gamma/beta: (C, 1).  Biased variance; the preceding Linear bias
    is omitted because it cancels exactly under the mean subtraction.
    """
    mean = jnp.mean(h, axis=1, keepdims=True)             # lane (XLU) reduction
    c = h - mean
    var = jnp.mean(c * c, axis=1, keepdims=True)
    scale = gamma * jax.lax.rsqrt(var + EPS)              # fold gamma into scale
    return jnp.maximum(c * scale + beta, 0.0)


def _fused_kernel(x_ref, w1_ref, aux1_ref, w2_ref, aux2_ref, w3b_ref, o_ref):
    x = x_ref[...]                                                     # (I, M)
    h1 = jnp.dot(w1_ref[...], x, preferred_element_type=jnp.float32)  # (l1, M)
    a1 = _bn_relu_lane(h1, aux1_ref[:, 1:2], aux1_ref[:, 2:3])
    h2 = jnp.dot(w2_ref[...], a1, preferred_element_type=jnp.float32)  # (l2, M)
    a2 = _bn_relu_lane(h2, aux2_ref[:, 1:2], aux2_ref[:, 2:3])
    w3 = w3b_ref[:, 0:1]                                               # (l2, 1)
    b3 = w3b_ref[0:1, 1:2]                                             # (1, 1)
    h3 = jnp.sum(a2 * w3, axis=0, keepdims=True) + b3                  # (1, M)
    o_ref[...] = jax.nn.sigmoid(h3)                                    # lane-dense


def _forward_fused(xm, params):
    w1, aux1, w2, aux2, w3b = params
    m = xm.shape[1]
    vmem = pl.BlockSpec(memory_space=pltpu.MemorySpace.VMEM)
    return pl.pallas_call(
        _fused_kernel,
        out_shape=jax.ShapeDtypeStruct((1, m), jnp.float32),
        in_specs=[vmem] * 6,
        out_specs=vmem,
        compiler_params=pltpu.CompilerParams(
            vmem_limit_bytes=_vmem_limit_bytes()),
    )(xm, w1, aux1, w2, aux2, w3b)


# ----------------------------------------------------------------------------
# Streaming path: M-tiled, BN stats from centered Gram matrices; no activation
# intermediate ever touches HBM.  Stats passes shard over a 2-wide "parallel"
# slot axis (v7x megacore), M axis is "arbitrary" (per-slot accumulators).
# ----------------------------------------------------------------------------

def _accumulate_stats(vals, s_ref, g_ref, *, col0, m_tile, m_true, need_mask):
    """Accumulate sum and Gram of `vals` (C, m_tile) into per-slot refs.

    Padding columns are zeroed; the mask is only evaluated on tiles that
    actually straddle/exceed m_true (review: mask only where needed).
    """
    def accum(v):
        s_ref[...] += jnp.sum(v, axis=1, keepdims=True)[None]
        g_ref[...] += jax.lax.dot_general(
            v, v, (((1,), (1,)), ((), ())),
            preferred_element_type=jnp.float32, precision=_EXACT)[None]

    if need_mask:
        is_partial = col0 + m_tile > m_true

        @pl.when(is_partial)
        def _():
            col = col0 + jax.lax.broadcasted_iota(jnp.int32, (1, m_tile), 1)
            accum(jnp.where(col < m_true, vals, 0.0))

        @pl.when(jnp.logical_not(is_partial))
        def _():
            accum(vals)
    else:
        accum(vals)


def _stats_x_kernel(x_ref, c_ref, s_ref, g_ref, *, m_tile, m_true,
                    tiles_per_slot, need_mask):
    # Pass A: centered input statistics (sum, Gram) per slot.
    @pl.when(pl.program_id(1) == 0)
    def _():
        s_ref[...] = jnp.zeros(s_ref.shape, s_ref.dtype)
        g_ref[...] = jnp.zeros(g_ref.shape, g_ref.dtype)

    xc = x_ref[...] - c_ref[...]                                    # (I, TM)
    col0 = (pl.program_id(0) * tiles_per_slot + pl.program_id(1)) * m_tile
    _accumulate_stats(xc, s_ref, g_ref, col0=col0, m_tile=m_tile,
                      m_true=m_true, need_mask=need_mask)


def _stats_a1_kernel(x_ref, w1_ref, bn1_ref, c_ref, s_ref, g_ref, *, m_tile,
                     m_true, tiles_per_slot, need_mask):
    # Pass B: recompute a1 = relu(BN1(W1 x)) per tile; accumulate its stats.
    @pl.when(pl.program_id(1) == 0)
    def _():
        s_ref[...] = jnp.zeros(s_ref.shape, s_ref.dtype)
        g_ref[...] = jnp.zeros(g_ref.shape, g_ref.dtype)

    h1 = jnp.dot(w1_ref[...], x_ref[...],
                 preferred_element_type=jnp.float32)                # (l1, TM)
    a1 = jnp.maximum(h1 * bn1_ref[:, 0:1] + bn1_ref[:, 1:2], 0.0)
    a1c = a1 - c_ref[...]
    col0 = (pl.program_id(0) * tiles_per_slot + pl.program_id(1)) * m_tile
    _accumulate_stats(a1c, s_ref, g_ref, col0=col0, m_tile=m_tile,
                      m_true=m_true, need_mask=need_mask)


def _apply_kernel(x_ref, w1_ref, bn1_ref, w2_ref, bn2_ref, w3b_ref, o_ref):
    # Pass C: full chain per tile; lane-dense (1, TM) output.
    h1 = jnp.dot(w1_ref[...], x_ref[...], preferred_element_type=jnp.float32)
    a1 = jnp.maximum(h1 * bn1_ref[:, 0:1] + bn1_ref[:, 1:2], 0.0)
    h2 = jnp.dot(w2_ref[...], a1, preferred_element_type=jnp.float32)
    a2 = jnp.maximum(h2 * bn2_ref[:, 0:1] + bn2_ref[:, 1:2], 0.0)
    h3 = (jnp.sum(a2 * w3b_ref[:, 0:1], axis=0, keepdims=True)
          + w3b_ref[0:1, 1:2])
    o_ref[...] = jax.nn.sigmoid(h3)


def _fold_stats(s, g, c, w, gamma, beta, m_true):
    """Turn centered Gram stats of the layer INPUT into training-mode BN
    (scale, shift) of the layer OUTPUT h = W @ v (biased variance).

    s: (slots, K, 1) = sum(v - c);  g: (slots, K, K) = sum((v-c)(v-c)^T);
    c: (K, 1) centering shift; w: (C, K); gamma/beta: (C, 1).
    """
    s = jnp.sum(s, axis=0)
    g = jnp.sum(g, axis=0)
    mean_c = s / m_true                           # mean of (v - c), (K, 1)
    mean_v = mean_c + c
    cov_v = g / m_true - mean_c * mean_c.T        # shift-invariant covariance
    mean_h = jnp.dot(w, mean_v, precision=_EXACT)                     # (C, 1)
    var_h = jnp.sum(jnp.dot(w, cov_v, precision=_EXACT) * w,
                    axis=1, keepdims=True)        # diag(W Cov W^T)
    var_h = jnp.maximum(var_h, 0.0)               # guard tiny negative round-off
    scale = gamma * jax.lax.rsqrt(var_h + EPS)
    shift = beta - mean_h * scale                 # Linear bias cancels exactly
    return jnp.concatenate([scale, shift], axis=1)                    # (C, 2)


def _forward_streaming(xm, params, m_tile, n_slots=2):
    w1, aux1, w2, aux2, w3b = params
    i_dim, m_true = xm.shape
    l1, l2 = w1.shape[0], w2.shape[0]

    m_tile = max(128, (int(m_tile) // 128) * 128)     # lane-tiling constraint
    n_tiles = -(-m_true // m_tile)
    tiles_per_slot = -(-n_tiles // n_slots)
    total_tiles = n_slots * tiles_per_slot
    mp = total_tiles * m_tile
    need_mask = mp != m_true
    if need_mask:
        xm = jnp.pad(xm, ((0, 0), (0, mp - m_true)))

    vmem_limit = _vmem_limit_bytes()
    cp_acc = pltpu.CompilerParams(
        dimension_semantics=("parallel", "arbitrary"),
        vmem_limit_bytes=vmem_limit)
    cp_par = pltpu.CompilerParams(
        dimension_semantics=("parallel",),
        vmem_limit_bytes=vmem_limit)

    # Cheap per-feature centering shift (first <=128 real columns) so the
    # Gram/mean subtraction in the fold stays well conditioned.
    ncol = min(128, m_true)
    c_x = jnp.mean(xm[:, :ncol], axis=1, keepdims=True)              # (I, 1)

    static = dict(m_tile=m_tile, m_true=m_true,
                  tiles_per_slot=tiles_per_slot, need_mask=need_mask)

    # ---- pass A: centered input stats --------------------------------------
    sx, gx = pl.pallas_call(
        functools.partial(_stats_x_kernel, **static),
        grid=(n_slots, tiles_per_slot),
        in_specs=[
            pl.BlockSpec((i_dim, m_tile),
                         lambda s, m: (0, s * tiles_per_slot + m)),
            pl.BlockSpec((i_dim, 1), lambda s, m: (0, 0)),
        ],
        out_specs=(
            pl.BlockSpec((1, i_dim, 1), lambda s, m: (s, 0, 0)),
            pl.BlockSpec((1, i_dim, i_dim), lambda s, m: (s, 0, 0)),
        ),
        out_shape=(
            jax.ShapeDtypeStruct((n_slots, i_dim, 1), jnp.float32),
            jax.ShapeDtypeStruct((n_slots, i_dim, i_dim), jnp.float32),
        ),
        compiler_params=cp_acc,
    )(xm, c_x)

    bn1 = _fold_stats(sx, gx, c_x, w1, aux1[:, 1:2], aux1[:, 2:3], m_true)

    # Centering shift estimate for the layer-1 activations (tiny host-side op).
    a1_head = jnp.maximum(
        jnp.dot(w1, xm[:, :ncol]) * bn1[:, 0:1] + bn1[:, 1:2], 0.0)
    c_a = jnp.mean(a1_head, axis=1, keepdims=True)                    # (l1, 1)

    # ---- pass B: recompute a1 per tile, centered stats ----------------------
    sa, ga = pl.pallas_call(
        functools.partial(_stats_a1_kernel, **static),
        grid=(n_slots, tiles_per_slot),
        in_specs=[
            pl.BlockSpec((i_dim, m_tile),
                         lambda s, m: (0, s * tiles_per_slot + m)),
            pl.BlockSpec((l1, i_dim), lambda s, m: (0, 0)),
            pl.BlockSpec((l1, 2), lambda s, m: (0, 0)),
            pl.BlockSpec((l1, 1), lambda s, m: (0, 0)),
        ],
        out_specs=(
            pl.BlockSpec((1, l1, 1), lambda s, m: (s, 0, 0)),
            pl.BlockSpec((1, l1, l1), lambda s, m: (s, 0, 0)),
        ),
        out_shape=(
            jax.ShapeDtypeStruct((n_slots, l1, 1), jnp.float32),
            jax.ShapeDtypeStruct((n_slots, l1, l1), jnp.float32),
        ),
        compiler_params=cp_acc,
    )(xm, w1, bn1, c_a)

    bn2 = _fold_stats(sa, ga, c_a, w2, aux2[:, 1:2], aux2[:, 2:3], m_true)

    # ---- pass C: full chain, lane-dense (1, M) output -----------------------
    y = pl.pallas_call(
        _apply_kernel,
        grid=(total_tiles,),
        in_specs=[
            pl.BlockSpec((i_dim, m_tile), lambda m: (0, m)),
            pl.BlockSpec((l1, i_dim), lambda m: (0, 0)),
            pl.BlockSpec((l1, 2), lambda m: (0, 0)),
            pl.BlockSpec((l2, l1), lambda m: (0, 0)),
            pl.BlockSpec((l2, 2), lambda m: (0, 0)),
            pl.BlockSpec((l2, 2), lambda m: (0, 0)),
        ],
        out_specs=pl.BlockSpec((1, m_tile), lambda m: (0, m)),
        out_shape=jax.ShapeDtypeStruct((1, mp), jnp.float32),
        compiler_params=cp_par,
    )(xm, w1, bn1, w2, bn2, w3b)

    # Padded columns hold benign sigmoid values; slice them away.
    return y[:, :m_true]


# ----------------------------------------------------------------------------
# Public forward + parameter helpers
# ----------------------------------------------------------------------------

def neural_network_forward(x, params, *, m_tile=8192, fused_max_m=None,
                           n_slots=2):
    """x: (batch, i, time) float32 -> (batch, 1, time) float32 (training-mode BN)."""
    b, i_dim, t = x.shape
    m = b * t
    w1, _, w2, _, _ = params
    if fused_max_m is None:
        fused_max_m = _derive_fused_max_m(i_dim, w1.shape[0], w2.shape[0])
    # Lay batch*time on the lane axis: (I, M).  Single cheap permute of the
    # small input; every downstream activation is lane-dense.
    xm = jnp.transpose(x, (1, 0, 2)).reshape(i_dim, m)
    if m <= fused_max_m:
        y = _forward_fused(xm, params)                     # (1, M)
    else:
        y = _forward_streaming(xm, params, m_tile, n_slots=n_slots)
    # (1, B*T) -> (B, 1, T): pure reshape, no data movement.
    return y.reshape(b, 1, t)


def init_params(key, i, l1, l2, *, randomize_affine=False):
    """Weights in PyTorch (out, in) layout, Xavier-uniform; packed aux arrays.

    aux = [bias | gamma | beta] per hidden layer (bias kept for interface
    fidelity; it cancels under training-mode BN).  w3b = [w3_col | b3].
    """
    def xavier(k, fan_in, fan_out):
        bound = math.sqrt(6.0 / (fan_in + fan_out))
        return jax.random.uniform(k, (fan_out, fan_in), jnp.float32, -bound, bound)

    ks = jax.random.split(key, 10)
    w1 = xavier(ks[0], i, l1)            # (l1, i)
    w2 = xavier(ks[1], l1, l2)           # (l2, l1)
    w3 = xavier(ks[2], l2, 1)            # (1, l2)

    if randomize_affine:
        b1 = 0.1 * jax.random.normal(ks[3], (l1, 1), jnp.float32)
        b2 = 0.1 * jax.random.normal(ks[4], (l2, 1), jnp.float32)
        b3 = 0.1 * jax.random.normal(ks[5], (1, 1), jnp.float32)
        g1 = 1.0 + 0.2 * jax.random.normal(ks[6], (l1, 1), jnp.float32)
        g2 = 1.0 + 0.2 * jax.random.normal(ks[7], (l2, 1), jnp.float32)
        be1 = 0.2 * jax.random.normal(ks[8], (l1, 1), jnp.float32)
        be2 = 0.2 * jax.random.normal(ks[9], (l2, 1), jnp.float32)
    else:  # module's _initialize_weights: zero bias, BN gamma=1 / beta=0
        b1 = jnp.zeros((l1, 1), jnp.float32)
        b2 = jnp.zeros((l2, 1), jnp.float32)
        b3 = jnp.zeros((1, 1), jnp.float32)
        g1 = jnp.ones((l1, 1), jnp.float32)
        g2 = jnp.ones((l2, 1), jnp.float32)
        be1 = jnp.zeros((l1, 1), jnp.float32)
        be2 = jnp.zeros((l2, 1), jnp.float32)

    aux1 = jnp.concatenate([b1, g1, be1], axis=1)            # (l1, 3)
    aux2 = jnp.concatenate([b2, g2, be2], axis=1)            # (l2, 3)
    b3col = jnp.zeros((l2, 1), jnp.float32).at[0, 0].set(b3[0, 0])
    w3b = jnp.concatenate([w3.T, b3col], axis=1)             # (l2, 2)
    return (w1, aux1, w2, aux2, w3b)


def reference_forward(x, params):
    """Pure-JAX mirror of the PyTorch module's forward (training-mode BN)."""
    w1, aux1, w2, aux2, w3b = params
    b1, g1, be1 = aux1[:, 0], aux1[:, 1], aux1[:, 2]
    b2, g2, be2 = aux2[:, 0], aux2[:, 1], aux2[:, 2]
    w3 = w3b[:, 0]
    b3 = w3b[0, 1]

    def bn(y, g, b):  # y: (B, C, T); stats over (batch, time); biased variance
        mean = jnp.mean(y, axis=(0, 2), keepdims=True)
        var = jnp.mean((y - mean) ** 2, axis=(0, 2), keepdims=True)
        return ((y - mean) * jax.lax.rsqrt(var + EPS) * g[None, :, None]
                + b[None, :, None])

    y = jnp.transpose(x, (2, 0, 1))                           # (T, B, I)
    y = jnp.einsum("tbi,ci->tbc", y, w1) + b1
    y = jnp.maximum(bn(jnp.transpose(y, (1, 2, 0)), g1, be1), 0.0)
    y = jnp.transpose(y, (2, 0, 1))
    y = jnp.einsum("tbc,dc->tbd", y, w2) + b2
    y = jnp.maximum(bn(jnp.transpose(y, (1, 2, 0)), g2, be2), 0.0)
    y = jnp.transpose(y, (2, 0, 1))
    # Final (out=1) layer as an exact f32 elementwise mul + reduce, matching the
    # kernel's VPU head.
    y = jnp.sum(y * w3[None, None, :], axis=-1, keepdims=True) + b3
    return jax.nn.sigmoid(jnp.transpose(y, (1, 2, 0)))        # (B, 1, T)


if __name__ == "__main__":
    key = jax.random.PRNGKey(0)
    kx1, kp1, kx2, kp2, kx3, kp3 = jax.random.split(key, 6)

    # Tolerance sized for DEFAULT-precision (bf16-operand, f32-accumulate) MXU
    # matmuls in the kernel (review: drop precision=HIGHEST) vs. the JAX
    # reference; post-sigmoid outputs, so real bugs show up as >=1e-2 errors.
    TOL = 5e-3

    # Case 1: module-sized shapes -> fully fused single-VMEM-block kernel.
    batch, feat, tsteps, l1, l2 = 2, 4, 8, 32, 32
    x1 = jax.random.normal(kx1, (batch, feat, tsteps), jnp.float32)
    p1 = init_params(kp1, feat, l1, l2, randomize_affine=True)
    y1 = neural_network_forward(x1, p1)
    jax.block_until_ready(y1)
    assert y1.shape == (batch, 1, tsteps) and y1.dtype == jnp.float32
    err1 = float(jnp.max(jnp.abs(y1 - reference_forward(x1, p1))))
    assert err1 < TOL, f"fused path mismatch vs reference: {err1}"

    # Case 2: force the streaming Gram-stats path (2 slots x 1 tile + padding).
    b2, f2, t2, l1b, l2b = 10, 5, 13, 48, 32                  # M = 130
    x2 = jax.random.normal(kx2, (b2, f2, t2), jnp.float32)
    p2 = init_params(kp2, f2, l1b, l2b, randomize_affine=True)
    y2 = neural_network_forward(x2, p2, m_tile=128, fused_max_m=0)
    jax.block_until_ready(y2)
    assert y2.shape == (b2, 1, t2) and y2.dtype == jnp.float32
    err2 = float(jnp.max(jnp.abs(y2 - reference_forward(x2, p2))))
    assert err2 < TOL, f"streaming path mismatch vs reference: {err2}"

    # Case 3: streaming with 2 tiles per slot and a fully padded trailing tile.
    b3, f3, t3 = 6, 5, 100                                    # M = 600
    x3 = jax.random.normal(kx3, (b3, f3, t3), jnp.float32)
    p3 = init_params(kp3, f3, 48, 32, randomize_affine=True)
    y3 = neural_network_forward(x3, p3, m_tile=256, fused_max_m=0)
    jax.block_until_ready(y3)
    assert y3.shape == (b3, 1, t3) and y3.dtype == jnp.float32
    err3 = float(jnp.max(jnp.abs(y3 - reference_forward(x3, p3))))
    assert err3 < TOL, f"streaming path (multi-tile) mismatch: {err3}"

    print("KERNEL_OK")
</pallas_src>

<mosaic_0001>
module attributes {stable_mosaic.version = 11 : i64} {
  func.func @_fused_kernel(%arg0: memref<4x16xf32, #tpu.memory_space<vmem>>, %arg1: memref<32x4xf32, #tpu.memory_space<vmem>>, %arg2: memref<32x3xf32, #tpu.memory_space<vmem>>, %arg3: memref<32x32xf32, #tpu.memory_space<vmem>>, %arg4: memref<32x3xf32, #tpu.memory_space<vmem>>, %arg5: memref<32x2xf32, #tpu.memory_space<vmem>>, %arg6: memref<1x16xf32, #tpu.memory_space<vmem>>) attributes {dimension_semantics = [], scalar_prefetch = 0 : i64, scratch_operands = 0 : i64, tpu.core_type = #tpu.core_type<tc>} {
    %c0 = arith.constant 0 : index
    %c0_0 = arith.constant 0 : index
    %0 = vector.load %arg0[%c0, %c0_0] : memref<4x16xf32, #tpu.memory_space<vmem>>, vector<4x16xf32>
    %c0_1 = arith.constant 0 : index
    %c0_2 = arith.constant 0 : index
    %1 = vector.load %arg1[%c0_1, %c0_2] : memref<32x4xf32, #tpu.memory_space<vmem>>, vector<32x4xf32>
    %cst = arith.constant dense<0.000000e+00> : vector<32x16xf32>
    %2 = tpu.matmul %1, %0, %cst {dimension_numbers = #tpu.dot_dimension_numbers<[1], [0], [0], [1], [0, 0, 1, 1], [], []>} : vector<32x4xf32>, vector<4x16xf32>, vector<32x16xf32> -> vector<32x16xf32>
    %c0_3 = arith.constant 0 : index
    %c1 = arith.constant 1 : index
    %3 = vector.load %arg2[%c0_3, %c1] : memref<32x3xf32, #tpu.memory_space<vmem>>, vector<32x1xf32>
    %c0_4 = arith.constant 0 : index
    %c2 = arith.constant 2 : index
    %4 = vector.load %arg2[%c0_4, %c2] : memref<32x3xf32, #tpu.memory_space<vmem>>, vector<32x1xf32>
    %cst_5 = arith.constant dense<0.000000e+00> : vector<32xf32>
    %5 = vector.multi_reduction <add>, %2, %cst_5 [1] : vector<32x16xf32> to vector<32xf32>
    %6 = vector.shape_cast %5 : vector<32xf32> to vector<32x1xf32>
    %cst_6 = arith.constant 1.600000e+01 : f32
    %7 = vector.broadcast %cst_6 : f32 to vector<32x1xf32>
    %8 = arith.divf %6, %7 : vector<32x1xf32>
    %9 = vector.broadcast %8 : vector<32x1xf32> to vector<32x16xf32>
    %10 = arith.subf %2, %9 : vector<32x16xf32>
    %11 = arith.mulf %10, %10 : vector<32x16xf32>
    %cst_7 = arith.constant dense<0.000000e+00> : vector<32xf32>
    %12 = vector.multi_reduction <add>, %11, %cst_7 [1] : vector<32x16xf32> to vector<32xf32>
    %13 = vector.shape_cast %12 : vector<32xf32> to vector<32x1xf32>
    %cst_8 = arith.constant 1.600000e+01 : f32
    %14 = vector.broadcast %cst_8 : f32 to vector<32x1xf32>
    %15 = arith.divf %13, %14 : vector<32x1xf32>
    %cst_9 = arith.constant 9.99999997E-7 : f32
    %16 = vector.broadcast %cst_9 : f32 to vector<32x1xf32>
    %17 = arith.addf %15, %16 : vector<32x1xf32>
    %18 = math.rsqrt %17 : vector<32x1xf32>
    %19 = arith.mulf %3, %18 : vector<32x1xf32>
    %20 = vector.broadcast %19 : vector<32x1xf32> to vector<32x16xf32>
    %21 = arith.mulf %10, %20 : vector<32x16xf32>
    %22 = vector.broadcast %4 : vector<32x1xf32> to vector<32x16xf32>
    %23 = arith.addf %21, %22 : vector<32x16xf32>
    %cst_10 = arith.constant 0.000000e+00 : f32
    %24 = vector.broadcast %cst_10 : f32 to vector<32x16xf32>
    %25 = arith.maximumf %23, %24 : vector<32x16xf32>
    %c0_11 = arith.constant 0 : index
    %c0_12 = arith.constant 0 : index
    %26 = vector.load %arg3[%c0_11, %c0_12] : memref<32x32xf32, #tpu.memory_space<vmem>>, vector<32x32xf32>
    %cst_13 = arith.constant dense<0.000000e+00> : vector<32x16xf32>
    %27 = tpu.matmul %26, %25, %cst_13 {dimension_numbers = #tpu.dot_dimension_numbers<[1], [0], [0], [1], [0, 0, 1, 1], [], []>} : vector<32x32xf32>, vector<32x16xf32>, vector<32x16xf32> -> vector<32x16xf32>
    %c0_14 = arith.constant 0 : index
    %c1_15 = arith.constant 1 : index
    %28 = vector.load %arg4[%c0_14, %c1_15] : memref<32x3xf32, #tpu.memory_space<vmem>>, vector<32x1xf32>
    %c0_16 = arith.constant 0 : index
    %c2_17 = arith.constant 2 : index
    %29 = vector.load %arg4[%c0_16, %c2_17] : memref<32x3xf32, #tpu.memory_space<vmem>>, vector<32x1xf32>
    %cst_18 = arith.constant dense<0.000000e+00> : vector<32xf32>
    %30 = vector.multi_reduction <add>, %27, %cst_18 [1] : vector<32x16xf32> to vector<32xf32>
    %31 = vector.shape_cast %30 : vector<32xf32> to vector<32x1xf32>
    %cst_19 = arith.constant 1.600000e+01 : f32
    %32 = vector.broadcast %cst_19 : f32 to vector<32x1xf32>
    %33 = arith.divf %31, %32 : vector<32x1xf32>
    %34 = vector.broadcast %33 : vector<32x1xf32> to vector<32x16xf32>
    %35 = arith.subf %27, %34 : vector<32x16xf32>
    %36 = arith.mulf %35, %35 : vector<32x16xf32>
    %cst_20 = arith.constant dense<0.000000e+00> : vector<32xf32>
    %37 = vector.multi_reduction <add>, %36, %cst_20 [1] : vector<32x16xf32> to vector<32xf32>
    %38 = vector.shape_cast %37 : vector<32xf32> to vector<32x1xf32>
    %cst_21 = arith.constant 1.600000e+01 : f32
    %39 = vector.broadcast %cst_21 : f32 to vector<32x1xf32>
    %40 = arith.divf %38, %39 : vector<32x1xf32>
    %cst_22 = arith.constant 9.99999997E-7 : f32
    %41 = vector.broadcast %cst_22 : f32 to vector<32x1xf32>
    %42 = arith.addf %40, %41 : vector<32x1xf32>
    %43 = math.rsqrt %42 : vector<32x1xf32>
    %44 = arith.mulf %28, %43 : vector<32x1xf32>
    %45 = vector.broadcast %44 : vector<32x1xf32> to vector<32x16xf32>
    %46 = arith.mulf %35, %45 : vector<32x16xf32>
    %47 = vector.broadcast %29 : vector<32x1xf32> to vector<32x16xf32>
    %48 = arith.addf %46, %47 : vector<32x16xf32>
    %cst_23 = arith.constant 0.000000e+00 : f32
    %49 = vector.broadcast %cst_23 : f32 to vector<32x16xf32>
    %50 = arith.maximumf %48, %49 : vector<32x16xf32>
    %c0_24 = arith.constant 0 : index
    %c0_25 = arith.constant 0 : index
    %51 = vector.load %arg5[%c0_24, %c0_25] : memref<32x2xf32, #tpu.memory_space<vmem>>, vector<32x1xf32>
    %c0_26 = arith.constant 0 : index
    %c1_27 = arith.constant 1 : index
    %52 = vector.load %arg5[%c0_26, %c1_27] : memref<32x2xf32, #tpu.memory_space<vmem>>, vector<1x1xf32>
    %53 = vector.broadcast %51 : vector<32x1xf32> to vector<32x16xf32>
    %54 = arith.mulf %50, %53 : vector<32x16xf32>
    %cst_28 = arith.constant dense<0.000000e+00> : vector<16xf32>
    %55 = vector.multi_reduction <add>, %54, %cst_28 [0] : vector<32x16xf32> to vector<16xf32>
    %56 = vector.shape_cast %55 : vector<16xf32> to vector<1x16xf32>
    %57 = vector.broadcast %52 : vector<1x1xf32> to vector<1x16xf32>
    %58 = arith.addf %56, %57 : vector<1x16xf32>
    %59 = arith.negf %58 : vector<1x16xf32>
    %60 = math.exp %59 : vector<1x16xf32>
    %cst_29 = arith.constant 1.000000e+00 : f32
    %61 = vector.broadcast %cst_29 : f32 to vector<1x16xf32>
    %62 = arith.addf %61, %60 : vector<1x16xf32>
    %63 = arith.divf %61, %62 : vector<1x16xf32>
    %c0_30 = arith.constant 0 : index
    %c0_31 = arith.constant 0 : index
    %64 = vector.load %arg6[%c0_30, %c0_31] : memref<1x16xf32, #tpu.memory_space<vmem>>, vector<1x16xf32>
    tpu.vector_store %arg6[%c0_30, %c0_31], %63 {strides = array<i32>} : memref<1x16xf32, #tpu.memory_space<vmem>>, vector<1x16xf32>,
    return
  }
}

</mosaic_0001>

<bundles_post_ra>
// kernel: tpu_custom_call.1
= control target key start
LH: loop header
LB: loop body
LE: loop exit
PB: predicated region body
PF: predicated region fallthrough
CT: control target
= control target key end

     0   :  { %vm42_vm0 = vcmask 1043456   ;;  %vm29_vm1 = vcmask 31744   ;;  %s826_s0 = inlined_call_operand.vmem [shape: f32[4,16], index: 0, kind: input, shape index: {}]   ;;  %s827_s1 = inlined_call_operand.vmem [shape: f32[32,4], index: 1, kind: input, shape index: {}]   ;;  %s828_s2 = inlined_call_operand.vmem [shape: f32[32,3], index: 2, kind: input, shape index: {}]   ;;  %s829_s3 = inlined_call_operand.vmem [shape: f32[32,32], index: 3, kind: input, shape index: {}]   ;;  %s830_s4 = inlined_call_operand.vmem [shape: f32[32,3], index: 4, kind: input, shape index: {}]   ;;  %s831_s5 = inlined_call_operand.vmem [shape: f32[32,2], index: 5, kind: input, shape index: {}]   ;;  %s832_s6 = inlined_call_operand.hbm [shape: f32[1,16], index: 6, kind: output, shape index: {}]  }
   0x1   :  { %v24_v0 = vld [vmem:[%s826_s0] sm:$0xf]  ;;  %v26_v2 = vld [vmem:[%s827_s1 + $0x8] sm:$0xff]  ;;  %v27_v3 = vld [vmem:[%s827_s1 + $0x10] sm:$0xff] }
   0x2   :  { %v25_v1 = vld [vmem:[%s827_s1] sm:$0xff]  ;;  %544 = vmatprep.subr.msk.mxu0 %vm42_vm0, %v24_v0 }
   0x3   :  { %546 = vmatprep.mubr.msk.f32.mxu0 %vm29_vm1, %v25_v1 }
   0x4   :  { %11 = vsyncpa [#allocation3], 0  ;;  %545 = vmatpush3.msk.msra.mxu0 %vm42_vm0, %v24_v0  ;;  %v28_v4 = vld [vmem:[%s827_s1 + $0x18] sm:$0xff]  ;;  %vm135_vm2 = vcmask 130048   ;;  %v638_v33 = vmov 1   ;;  %v131_v40 = vld [vmem:[%s828_s2] sm:$0xff] }
   0x5   :  { %547 = vmatmul.mubr.msk.f32.vlgmr.msra.gmra.mrb[0].mxu0 %vm29_vm1, %v26_v2  ;;  %582 = vset.pattern.permute.xlu0 %v638_v33  ;;  %v132_v45 = vld [vmem:[%s828_s2 + $0x8] sm:$0xff]  ;;  %v639_v51 = vmov 2   ;;  %v133_v53 = vld [vmem:[%s828_s2 + $0x10] sm:$0xff]  ;;  %v134_v55 = vld [vmem:[%s828_s2 + $0x18] sm:$0xff]  ;;  %vm245_vm3 = vcmask 261120   ;;  %vm505_vm4 = vcmask 122880  }
   0x6   :  { %549 = vmatprep.mubr.msk.f32.mxu0 %vm29_vm1, %v27_v3  ;;  %583 = vset.pattern.permute.xlu1 %v638_v33  ;;  %v241_v59 = vld [vmem:[%s829_s3] sm:$0xff]  ;;  %v243_v60 = vld [vmem:[%s829_s3 + $0x10] sm:$0xff] }
   0x7   :  { %563 = vmatprep.mubr.msk.f32.mxu1 %vm245_vm3, %v243_v60 }
   0x9   :  { %550 = vmatmul.mubr.msk.f32.gmra.mrb[2].mxu0 %vm29_vm1, %v28_v4 }
   0xa   :  { %560 = vmatprep.mubr.msk.f32.mxu0 %vm245_vm3, %v241_v59 }
  0xd8   :  { %v548_v5 = vpop.f32.mrb[0].mxu0 }
  0xd9   :  { %v112_v6 = vpop.f32.mrb[1].mxu0  ;;  %v139_v10 = vsel %vm135_vm2, %v548_v5, 0.0 }
  0xda   :  { %v136_v7 = vsel %vm135_vm2, %v112_v6, 0.0 }
  0xdb   :  { %137 = vadd.xlane.f32.xlu0 %v136_v7 }
  0xdc   :  { %v551_v8 = vpop.f32.mrb[2].mxu0 }
  0xdd   :  { %v122_v9 = vpop.f32.mrb[3].mxu0  ;;  %v145_v12 = vsel %vm135_vm2, %v551_v8, 0.0 }
  0xde   :  { %v142_v11 = vsel %vm135_vm2, %v122_v9, 0.0 }
  0xdf   :  { %140 = vadd.xlane.f32.xlu0 %v139_v10  ;;  %143 = vadd.xlane.f32.xlu1 %v142_v11 }
  0xe3   :  { %146 = vadd.xlane.f32.xlu1 %v145_v12 }
 0x168   :  { %v138_v13 = vpop.xlane.xlu0 %137 }
 0x169   :  { %v149_v14 = vmul.f32 0.0625, %v138_v13 }
 0x16b   :  { %v696_v15 = vsub.f32 %v112_v6, %v149_v14 }
 0x16c   :  { %v141_v16 = vpop.xlane.xlu0 %140  ;;  %v144_v17 = vpop.xlane.xlu1 %143 }
 0x16d   :  { %v150_v18 = vmul.f32 0.0625, %v141_v16  ;;  %v151_v19 = vmul.f32 0.0625, %v144_v17  ;;  %v157_v20 = vmul.f32 %v696_v15, %v696_v15 }
 0x16f   :  { %v700_v21 = vsub.f32 %v548_v5, %v150_v18  ;;  %v702_v22 = vsub.f32 %v122_v9, %v151_v19  ;;  %v161_v23 = vsel %vm135_vm2, %v157_v20, 0.0  ;;  %v242_v19 = vld [vmem:[%s829_s3 + $0x8] sm:$0xff]  ;;  %v244_v20 = vld [vmem:[%s829_s3 + $0x18] sm:$0xff] }
 0x170   :  { %162 = vadd.xlane.f32.xlu0 %v161_v23  ;;  %v147_v24 = vpop.xlane.xlu1 %146 }
 0x171   :  { %v152_v25 = vmul.f32 0.0625, %v147_v24  ;;  %v158_v26 = vmul.f32 %v700_v21, %v700_v21  ;;  %v159_v27 = vmul.f32 %v702_v22, %v702_v22 }
 0x173   :  { %v709_v28 = vsub.f32 %v551_v8, %v152_v25  ;;  %v164_v29 = vsel %vm135_vm2, %v158_v26, 0.0  ;;  %v167_v30 = vsel %vm135_vm2, %v159_v27, 0.0 }
 0x174   :  { %165 = vadd.xlane.f32.xlu1 %v164_v29  ;;  %168 = vadd.xlane.f32.xlu0 %v167_v30 }
 0x175   :  { %v160_v31 = vmul.f32 %v709_v28, %v709_v28 }
 0x177   :  { %v170_v32 = vsel %vm135_vm2, %v160_v31, 0.0 }
 0x178   :  { %171 = vadd.xlane.f32.xlu1 %v170_v32 }
 0x1fd   :  { %v163_v34 = vpop.xlane.xlu0 %162 }
 0x1fe   :  { %v173_v35 = vmul.f32 0.0625, %v163_v34 }
 0x200   :  { %v177_v36 = vadd.f32 1e-06, %v173_v35 }
 0x201   :  { %v166_v37 = vpop.xlane.xlu1 %165  ;;  %v169_v46 = vpop.xlane.xlu0 %168 }
 0x202   :  { %594 = vrsqrt.f32 %v177_v36  ;;  %v174_v38 = vmul.f32 0.0625, %v166_v37  ;;  %v175_v49 = vmul.f32 0.0625, %v169_v46 }
 0x204   :  { %v178_v39 = vadd.f32 1e-06, %v174_v38  ;;  %v179_v52 = vadd.f32 1e-06, %v175_v49 }
 0x205   :  { %v172_v42 = vpop.xlane.xlu1 %171 }
 0x206   :  { %596 = vrsqrt.f32 %v178_v39  ;;  %v176_v44 = vmul.f32 0.0625, %v172_v42 }
 0x208   :  { %v180_v50 = vadd.f32 1e-06, %v176_v44 }
 0x20a   :  { %598 = vrsqrt.f32 %v180_v50  ;;  %v344_v50 = vld [vmem:[%s830_s4 + $0x8] sm:$0xff] }
 0x20b   :  { %600 = vrsqrt.f32 %v179_v52  ;;  %v343_v52 = vld [vmem:[%s830_s4] sm:$0xff] }
 0x20c   :  { %v595_v41 = vpop.eup %594 }
 0x20d   :  { %v185_v43 = vmul.f32 %v595_v41, %v131_v40 }
 0x20f   :  { %191 = vperm.xlu0 %582, %v185_v43  }
 0x210   :  { %v597_v47 = vpop.eup %596 }
 0x211   :  { %v186_v48 = vmul.f32 %v597_v47, %v132_v45 }
 0x213   :  { %587 = vset.pattern.permute.xlu0 %v639_v51  ;;  %196 = vperm.xlu1 %583, %v186_v48  }
 0x214   :  { %v599_v54 = vpop.eup %598 }
 0x215   :  { %v188_v56 = vmul.f32 %v599_v54, %v134_v55  ;;  %v601_v57 = vpop.eup %600 }
 0x216   :  { %v187_v58 = vmul.f32 %v601_v57, %v133_v53 }
 0x217   :  { %584 = vset.pattern.permute.xlu1 %v639_v51 }
 0x218   :  { %215 = vperm.xlu1 %584, %v131_v40  }
 0x21c   :  { %220 = vperm.xlu1 %584, %v132_v45  }
 0x220   :  { %225 = vperm.xlu1 %584, %v133_v53   ;;  %v345_v53 = vld [vmem:[%s830_s4 + $0x10] sm:$0xff] }
 0x224   :  { %585 = vset.pattern.permute.xlu1 %v638_v33 }
 0x225   :  { %206 = vperm.xlu1 %585, %v188_v56  }
 0x229   :  { %201 = vperm.xlu1 %585, %v187_v58  }
 0x22d   :  { %586 = vset.pattern.permute.xlu1 %v639_v51  ;;  %v346_v51 = vld [vmem:[%s830_s4 + $0x18] sm:$0xff] }
 0x22e   :  { %230 = vperm.xlu1 %586, %v134_v55  }
 0x28e   :  { %v192_v62 = vpop.permute.xlu0 %191 }
 0x28f   :  { %v209_v0 = vmul.f32 %v192_v62, %v696_v15 }
 0x292   :  { %v197_v61 = vpop.permute.xlu1 %196 }
 0x293   :  { %v210_v1 = vmul.f32 %v197_v61, %v700_v21 }
 0x297   :  { %v216_v63 = vpop.permute.xlu1 %215 }
 0x298   :  { %v233_v2 = vadd.f32 %v216_v63, %v209_v0 }
 0x29a   :  { %v237_v5 = vmax.f32 %v233_v2, 0.0 }
 0x29b   :  { %v221_v3 = vpop.permute.xlu1 %220 }
 0x29c   :  { %v234_v4 = vadd.f32 %v221_v3, %v210_v1 }
 0x29e   :  { %v238_v6 = vmax.f32 %v234_v4, 0.0 }
 0x29f   :  { %v226_v7 = vpop.permute.xlu1 %225 }
 0x2a0   :  { %v566_v8 = vpack.c.bf16 %v238_v6, %v237_v5 }
 0x2a2   :  { %567 = vmatprep.subr.bf16.mxu0 %v566_v8  ;;  %574 = vmatprep.subr.bf16.mxu1 %v566_v8 }
 0x2a3   :  { %569 = vmatpush3.bf16.msra.mxu0 %v566_v8  ;;  %576 = vmatpush3.bf16.msra.mxu1 %v566_v8 }
 0x2a4   :  { %v207_v9 = vpop.permute.xlu1 %206 }
 0x2a5   :  { %v212_v12 = vmul.f32 %v207_v9, %v709_v28 }
 0x2a8   :  { %v202_v10 = vpop.permute.xlu1 %201 }
 0x2a9   :  { %v211_v11 = vmul.f32 %v202_v10, %v702_v22  ;;  %v640_v10 = vmov 0  }
 0x2ab   :  { %v235_v13 = vadd.f32 %v226_v7, %v211_v11  ;;  %v451_v7 = vld [vmem:[%s831_s5] sm:$0xff]  ;;  %v454_v11 = vld [vmem:[%s831_s5 + $0x18] sm:$0xff] }
 0x2ad   :  { %v231_v14 = vpop.permute.xlu1 %230  ;;  %v239_v16 = vmax.f32 %v235_v13, 0.0  ;;  %v452_v13 = vld [vmem:[%s831_s5 + $0x8] sm:$0xff] }
 0x2ae   :  { %v236_v15 = vadd.f32 %v231_v14, %v212_v12  ;;  %v453_v14 = vld [vmem:[%s831_s5 + $0x10] sm:$0xff] }
 0x2b0   :  { %v240_v17 = vmax.f32 %v236_v15, 0.0  ;;  %v455_v15 = vld [vmem:[%s831_s5] sm:$0x1]  ;;  %s641_s5 = smov [#allocation2]  }
 0x2b1   :  { %s513_s10 = sshll.u32 %s641_s5, 4  ;;  %s514_s10 = int_to_ptr.vmem [resolvable:$true] %s513_s10 }
 0x2b2   :  { %v570_v18 = vpack.c.bf16 %v240_v17, %v239_v16  ;;  %s614_s11 = scalar_lea.vmem %s514_s10, 16  ;;  %s618_s12 = scalar_lea.vmem %s514_s10, 32 }
 0x2b3   :  { %p615_p0 = scmp.ne.s32.totalorder %s514_s10, %s614_s11  ;;  %p619_p1 = scmp.lt.s32.totalorder %s514_s10, %s514_s10 }
 0x2b4   :  { %571 = vmatprep.subr.bf16.mxu0 %v570_v18  ;;  %575 = vmatprep.subr.bf16.mxu1 %v570_v18  ;;  %p620_p2 = scmp.lt.s32.totalorder %s618_s12, %s614_s11 }
 0x2b5   :  { %573 = vmatpush3.bf16.msra.mxu0 %v570_v18  ;;  %577 = vmatpush3.bf16.msra.mxu1 %v570_v18 }
 0x2b6   :  { %p621_p3 = por %p620_p2, %p619_p1 }
 0x2b8   :  { %561 = vmatmul.mubr.msk.f32.vlgmr.msra.gmra.mrb[4].mxu0 %vm245_vm3, %v242_v19  ;;  %564 = vmatmul.mubr.msk.f32.vlgmr.msra.gmra.mrb[0].mxu1 %vm245_vm3, %v244_v20  ;;  %p622_p4 = pnand %p621_p3, %p615_p0 }
 0x38b   :  { %v562_v21 = vpop.f32.mrb[4].mxu0  ;;  %v565_v22 = vpop.f32.mrb[0].mxu1 }
 0x38c   :  { %v324_v23 = vpop.f32.mrb[5].mxu0  ;;  %v350_v24 = vsel %vm135_vm2, %v562_v21, 0.0  ;;  %v334_v25 = vpop.f32.mrb[1].mxu1  ;;  %v356_v28 = vsel %vm135_vm2, %v565_v22, 0.0 }
 0x38d   :  { %351 = vadd.xlane.f32.xlu0 %v350_v24  ;;  %v347_v26 = vsel %vm135_vm2, %v324_v23, 0.0  ;;  %v353_v27 = vsel %vm135_vm2, %v334_v25, 0.0 }
 0x38e   :  { %348 = vadd.xlane.f32.xlu1 %v347_v26 }
 0x391   :  { %354 = vadd.xlane.f32.xlu0 %v353_v27 }
 0x392   :  { %357 = vadd.xlane.f32.xlu1 %v356_v28 }
 0x41a   :  { %v352_v29 = vpop.xlane.xlu0 %351 }
 0x41b   :  { %v360_v30 = vmul.f32 0.0625, %v352_v29  ;;  %v349_v31 = vpop.xlane.xlu1 %348 }
 0x41c   :  { %v359_v32 = vmul.f32 0.0625, %v349_v31 }
 0x41d   :  { %v755_v34 = vsub.f32 %v562_v21, %v360_v30 }
 0x41e   :  { %v757_v35 = vsub.f32 %v324_v23, %v359_v32  ;;  %v355_v36 = vpop.xlane.xlu0 %354 }
 0x41f   :  { %v361_v37 = vmul.f32 0.0625, %v355_v36  ;;  %v358_v38 = vpop.xlane.xlu1 %357  ;;  %v368_v39 = vmul.f32 %v755_v34, %v755_v34 }
 0x420   :  { %v362_v40 = vmul.f32 0.0625, %v358_v38  ;;  %v367_v41 = vmul.f32 %v757_v35, %v757_v35 }
 0x421   :  { %v763_v42 = vsub.f32 %v334_v25, %v361_v37  ;;  %v374_v43 = vsel %vm135_vm2, %v368_v39, 0.0 }
 0x422   :  { %v766_v44 = vsub.f32 %v565_v22, %v362_v40  ;;  %375 = vadd.xlane.f32.xlu1 %v374_v43  ;;  %v371_v45 = vsel %vm135_vm2, %v367_v41, 0.0 }
 0x423   :  { %372 = vadd.xlane.f32.xlu0 %v371_v45  ;;  %v369_v46 = vmul.f32 %v763_v42, %v763_v42 }
 0x424   :  { %v370_v47 = vmul.f32 %v766_v44, %v766_v44 }
 0x425   :  { %v377_v48 = vsel %vm135_vm2, %v369_v46, 0.0 }
 0x426   :  { %v380_v49 = vsel %vm135_vm2, %v370_v47, 0.0 }
 0x427   :  { %378 = vadd.xlane.f32.xlu0 %v377_v48  ;;  %381 = vadd.xlane.f32.xlu1 %v380_v49 }
 0x438   :  { %430 = vperm.xlu1 %586, %v344_v50  }
 0x43c   :  { %440 = vperm.xlu1 %586, %v346_v51  }
 0x43d   :  { %425 = vperm.xlu0 %587, %v343_v52  }
 0x440   :  { %588 = vset.pattern.permute.xlu1 %v638_v33 }
 0x441   :  { %435 = vperm.xlu0 %587, %v345_v53  }
 0x445   :  { %589 = vset.pattern.permute.xlu0 %v638_v33 }
 0x4af   :  { %v376_v54 = vpop.xlane.xlu1 %375 }
 0x4b0   :  { %v384_v55 = vmul.f32 0.0625, %v376_v54  ;;  %v373_v56 = vpop.xlane.xlu0 %372 }
 0x4b1   :  { %v383_v57 = vmul.f32 0.0625, %v373_v56 }
 0x4b2   :  { %v388_v58 = vadd.f32 1e-06, %v384_v55 }
 0x4b3   :  { %v387_v59 = vadd.f32 1e-06, %v383_v57 }
 0x4b4   :  { %602 = vrsqrt.f32 %v388_v58  ;;  %v379_v60 = vpop.xlane.xlu0 %378  ;;  %v382_v61 = vpop.xlane.xlu1 %381 }
 0x4b5   :  { %604 = vrsqrt.f32 %v387_v59  ;;  %v385_v62 = vmul.f32 0.0625, %v379_v60  ;;  %v386_v63 = vmul.f32 0.0625, %v382_v61 }
 0x4b7   :  { %v390_v0 = vadd.f32 1e-06, %v386_v63  ;;  %v389_v1 = vadd.f32 1e-06, %v385_v62 }
 0x4b8   :  { %v431_v17 = vpop.permute.xlu1 %430 }
 0x4b9   :  { %606 = vrsqrt.f32 %v390_v0 }
 0x4ba   :  { %608 = vrsqrt.f32 %v389_v1 }
 0x4bc   :  { %v426_v16 = vpop.permute.xlu0 %425  ;;  %v441_v19 = vpop.permute.xlu1 %440 }
 0x4be   :  { %v603_v2 = vpop.eup %602 }
 0x4bf   :  { %v605_v3 = vpop.eup %604  ;;  %v396_v4 = vmul.f32 %v603_v2, %v344_v50 }
 0x4c0   :  { %v395_v5 = vmul.f32 %v605_v3, %v343_v52  ;;  %v436_v18 = vpop.permute.xlu0 %435 }
 0x4c1   :  { %406 = vperm.xlu1 %588, %v396_v4  }
 0x4c2   :  { %401 = vperm.xlu0 %589, %v395_v5  }
 0x4c3   :  { %v607_v6 = vpop.eup %606 }
 0x4c4   :  { %v398_v8 = vmul.f32 %v607_v6, %v346_v51  ;;  %v609_v9 = vpop.eup %608 }
 0x4c5   :  { %v397_v12 = vmul.f32 %v609_v9, %v345_v53 }
 0x4c6   :  { %590 = vset.pattern.permute.xlu0 %v640_v10  ;;  %416 = vperm.xlu1 %588, %v398_v8  }
 0x4c7   :  { %458 = vperm.xlu0 %590, %v451_v7  }
 0x4ca   :  { %411 = vperm.xlu1 %588, %v397_v12  }
 0x4cb   :  { %473 = vperm.xlu0 %590, %v454_v11  }
 0x4ce   :  { %591 = vset.pattern.permute.xlu1 %v640_v10 }
 0x4cf   :  { %593 = vset.pattern.permute.xlu0 %v638_v33  ;;  %463 = vperm.xlu1 %591, %v452_v13  }
 0x4d3   :  { %468 = vperm.xlu1 %591, %v453_v14  }
 0x4d7   :  { %592 = vset.pattern.permute.xlu1 %v638_v33 }
 0x4d8   :  { %495 = vperm.xlu1 %592, %v455_v15  }
 0x540   :  { %v407_v20 = vpop.permute.xlu1 %406 }
 0x541   :  { %v402_v21 = vpop.permute.xlu0 %401  ;;  %v420_v23 = vmul.f32 %v407_v20, %v755_v34 }
 0x542   :  { %v419_v22 = vmul.f32 %v402_v21, %v757_v35 }
 0x543   :  { %v444_v27 = vadd.f32 %v431_v17, %v420_v23 }
 0x544   :  { %v443_v25 = vadd.f32 %v426_v16, %v419_v22 }
 0x545   :  { %v417_v24 = vpop.permute.xlu1 %416  ;;  %v448_v36 = vmax.f32 %v444_v27, 0.0 }
 0x546   :  { %v422_v26 = vmul.f32 %v417_v24, %v766_v44  ;;  %v459_v29 = vpop.permute.xlu0 %458  ;;  %v447_v31 = vmax.f32 %v443_v25, 0.0 }
 0x548   :  { %v446_v30 = vadd.f32 %v441_v19, %v422_v26  ;;  %v476_v38 = vmul.f32 %v459_v29, %v447_v31 }
 0x549   :  { %v412_v28 = vpop.permute.xlu1 %411 }
 0x54a   :  { %v421_v33 = vmul.f32 %v412_v28, %v763_v42  ;;  %v450_v39 = vmax.f32 %v446_v30, 0.0  ;;  %v474_v35 = vpop.permute.xlu0 %473  ;;  %v480_v44 = vsel %vm135_vm2, %v476_v38, 0.0 }
 0x54c   :  { %v445_v32 = vadd.f32 %v436_v18, %v421_v33  ;;  %v479_v45 = vmul.f32 %v474_v35, %v450_v39 }
 0x54e   :  { %v464_v37 = vpop.permute.xlu1 %463  ;;  %v449_v41 = vmax.f32 %v445_v32, 0.0  ;;  %v485_v49 = vsel %vm135_vm2, %v479_v45, 0.0 }
 0x54f   :  { %v477_v40 = vmul.f32 %v464_v37, %v448_v36 }
 0x551   :  { %v481_v34 = vsel %vm135_vm2, %v477_v40, 0.0 }
 0x552   :  { %v469_v43 = vpop.permute.xlu1 %468  ;;  %v482_v47 = vadd.f32 %v481_v34, %v480_v44 }
 0x553   :  { %v478_v46 = vmul.f32 %v469_v43, %v449_v41 }
 0x555   :  { %v483_v42 = vsel %vm135_vm2, %v478_v46, 0.0 }
 0x556   :  { %v484_v48 = vadd.f32 %v483_v42, %v482_v47 }
 0x557   :  { %v496_v56 = vpop.permute.xlu1 %495 }
 0x558   :  { %v486_v50 = vadd.f32 %v485_v49, %v484_v48 }
 0x55a   :  { %v487_v51 = vrot.slane %v486_v50, 4 }
 0x55c   :  { %v488_v52 = vadd.f32 %v487_v51, %v486_v50 }
 0x55e   :  { %v489_v53 = vrot.slane %v488_v52, 2 }
 0x560   :  { %v490_v54 = vadd.f32 %v489_v53, %v488_v52 }
 0x562   :  { %v491_v55 = vrot.slane %v490_v54, 1 }
 0x564   :  { %v492_v57 = vadd.f32 %v491_v55, %v490_v54 }
 0x566   :  { %v498_v58 = vadd.f32 %v496_v56, %v492_v57 }
 0x568   :  { %v530_v59 = vmul.f32 -1.442695, %v498_v58 }
 0x56a   :  { %610 = vpow2.f32 %v530_v59 }
 0x574   :  { %v611_v60 = vpop.eup %610 }
 0x575   :  { %v502_v61 = vadd.f32 1.0, %v611_v60 }
 0x577   :  { %612 = vrcp.f32 %v502_v61 }
 0x581   :  { %v613_v62 = vpop.eup %612 }
 0x582   :  { %506 = vst.msk [vmem:[#allocation2] sm:$0x1] %vm505_vm4, %v613_v62 }
 0x583   :  { %625 = shalt.err (!%p622_p4)
}
 0x584   :  { %s626_s15 = scalar_lea.hbm %s832_s6, 16 }
 0x585   :  { %p627_p5 = scmp.ne.s32.totalorder %s832_s6, %s626_s15  ;;  %p630_p6 = scmp.lt.u32.totalorder %s626_s15, %s832_s6 }
 0x587   :  { %p632_p7 = pnand %p630_p6, %p627_p5 }
 0x589   :  { %635 = shalt.err (!%p632_p7)
}
 0x58a   :  { %516 = dma.vmem_to_hbm [thread:$0]  %s514_s10, 16, %s832_s6, [#allocation3]  }
 0x58b   :  { %636 = dma.done.wait [#allocation3], 16  }
 0x58c   :  { %637 = vsyncadd [#allocation3], 4294967280 }
 0x58d   :  { %520 = vsyncpa [#allocation3], 1 }

</bundles_post_ra>
